<compile_context>
chip_gen: v6e
topology: v6e:2x2x1
jax: 0.10.0
libtpu: 0.0.40
codegen_flags: <defaults>
</compile_context>

<pallas_src>
import functools

import jax
import jax.numpy as jnp
from jax.experimental import pallas as pl
from jax.experimental.pallas import tpu as pltpu

LANES = 128
MAX_BLOCK_ROWS = 2048   # (2048,128) f32 = 1 MiB/buffer -> fits v5e/v6e/v7x VMEM budgets
NUM_CORES = 2           # leading "parallel" grid axis (2 TCs on v7x; harmless on 1-TC chips)
ACC_ROWS = 8            # accumulator is one f32 vreg tall


def _bce_kernel(p_ref, y_ref, o_ref, acc_ref, *,
                beta, eps, from_logits, total,
                block_rows, total_blocks, inner, need_mask):
    c = pl.program_id(0)           # core / outer-parallel index
    i = pl.program_id(1)           # inner (reduction) index
    b = c * inner + i              # global block index along the row axis

    @pl.when(i == 0)
    def _():
        acc_ref[...] = jnp.zeros_like(acc_ref)

    def accumulate(mask_tail):
        x = p_ref[...].astype(jnp.float32)
        y = y_ref[...].astype(jnp.float32)

        if from_logits:
            # Shared-exp logsigmoid: 1 exp + 1 log per element (vs exp+div+2 logs).
            l = jnp.log(1.0 + jnp.exp(-jnp.abs(x)))
            log_p = jnp.minimum(x, 0.0) - l          # ~ log(sigmoid(x) + eps)
            log_1mp = jnp.minimum(-x, 0.0) - l       # ~ log(1 - sigmoid(x) + eps)
        else:
            log_p = jnp.log(x + eps)
            log_1mp = jnp.log(1.0 - x + eps)

        loss = beta * (y * log_p) + (1.0 - beta) * ((1.0 - y) * log_1mp)

        if mask_tail:
            row = jax.lax.broadcasted_iota(jnp.int32, loss.shape, 0)
            col = jax.lax.broadcasted_iota(jnp.int32, loss.shape, 1)
            flat = (b * block_rows + row) * LANES + col
            loss = jnp.where(flat < total, loss, 0.0)

        # Reduce only along sublane groups (VPU adds); keep lanes intact.
        if block_rows % ACC_ROWS == 0:
            partial = loss.reshape(block_rows // ACC_ROWS, ACC_ROWS, LANES).sum(axis=0)
            acc_ref[...] += partial
        else:
            # Tiny-input fallback (single block smaller than 8 rows mult.).
            acc_ref[0:1, :] += loss.sum(axis=0, keepdims=True)

    if need_mask:
        @pl.when(b == total_blocks - 1)
        def _():
            accumulate(True)

        @pl.when(b < total_blocks - 1)
        def _():
            accumulate(False)
    else:
        @pl.when(b < total_blocks)
        def _():
            accumulate(False)

    @pl.when(i == inner - 1)
    def _():
        # Un-normalized, un-negated lane-wise partial sums for this core.
        o_ref[...] = acc_ref[...]


def modified_bce_loss(preds, labels, *, beta=0.5, eps=1e-7, from_logits=True):
    assert preds.shape == labels.shape
    total = int(preds.size)

    rows = pl.cdiv(total, LANES)
    padded = rows * LANES

    # Stream original dtype; cast in-kernel. Only pad (<128 elems) if needed.
    p_flat = preds.reshape(-1)
    y_flat = labels.reshape(-1)
    if padded != total:
        p_flat = jnp.pad(p_flat, (0, padded - total))
        y_flat = jnp.pad(y_flat, (0, padded - total))

    p2d = p_flat.reshape(rows, LANES)
    y2d = y_flat.reshape(rows, LANES)

    block_rows = min(rows, MAX_BLOCK_ROWS)
    total_blocks = pl.cdiv(rows, block_rows)
    inner = pl.cdiv(total_blocks, NUM_CORES)

    # Mask only needed if the tiling over-covers the real element count.
    need_mask = (total_blocks * block_rows * LANES) != total

    kernel = functools.partial(
        _bce_kernel,
        beta=float(beta), eps=float(eps), from_logits=bool(from_logits),
        total=total, block_rows=int(block_rows),
        total_blocks=int(total_blocks), inner=int(inner),
        need_mask=bool(need_mask))

    def in_map(c, i):
        # Clamp so idle trailing steps of the second core never DMA out of
        # range; their contribution is skipped in-kernel (b >= total_blocks).
        return (jnp.minimum(c * inner + i, total_blocks - 1), 0)

    partials = pl.pallas_call(
        kernel,
        out_shape=jax.ShapeDtypeStruct((NUM_CORES * ACC_ROWS, LANES), jnp.float32),
        grid_spec=pltpu.PrefetchScalarGridSpec(
            num_scalar_prefetch=0,
            grid=(NUM_CORES, inner),
            in_specs=[
                pl.BlockSpec((block_rows, LANES), in_map),
                pl.BlockSpec((block_rows, LANES), in_map),
            ],
            out_specs=pl.BlockSpec((ACC_ROWS, LANES), lambda c, i: (c, 0)),
            scratch_shapes=[pltpu.VMEM((ACC_ROWS, LANES), jnp.float32)],
        ),
        compiler_params=pltpu.CompilerParams(
            dimension_semantics=("parallel", "arbitrary")),
    )(p2d, y2d)

    # Final cross-lane/core reduction, negate and mean (tiny: 2*8*128 floats).
    return -jnp.sum(partials) / jnp.float32(total)


def _reference(preds, labels, beta=0.5, eps=1e-7, from_logits=True):
    # Faithful translation of the PyTorch module (eps inside the log).
    preds = preds.astype(jnp.float32)
    labels = labels.astype(jnp.float32)
    if from_logits:
        preds = jnp.exp(jax.nn.log_sigmoid(preds))
    loss = beta * (labels * jnp.log(preds + eps)) + \
        (1 - beta) * ((1 - labels) * jnp.log(1 - preds + eps))
    return -jnp.mean(loss)


if __name__ == "__main__":
    key = jax.random.PRNGKey(0)
    k1, k2 = jax.random.split(key)

    # Small NCHW-shaped example: batch=2, channels=4, spatial=16x16.
    preds = jax.random.normal(k1, (2, 4, 16, 16), dtype=jnp.float32)
    labels = (jax.random.uniform(k2, (2, 4, 16, 16)) > 0.5).astype(jnp.float32)

    out = modified_bce_loss(preds, labels)
    out = jax.block_until_ready(out)

    ref = _reference(preds, labels)
    # eps is outside the log in the kernel's from_logits path -> O(1e-7)
    # per-element deviation from the PyTorch formula; well within tolerance.
    assert jnp.allclose(out, ref, rtol=1e-5, atol=5e-6), (out, ref)

    print("KERNEL_OK")
</pallas_src>

<mosaic_0001>
module attributes {stable_mosaic.version = 11 : i64} {
  func.func @_bce_kernel(%arg0: i32, %arg1: i32, %arg2: memref<16x128xf32, #tpu.memory_space<vmem>>, %arg3: memref<16x128xf32, #tpu.memory_space<vmem>>, %arg4: memref<8x128xf32, #tpu.memory_space<vmem>>, %arg5: memref<8x128xf32, #tpu.memory_space<vmem>>) attributes {dimension_semantics = [#tpu.dimension_semantics<parallel>, #tpu.dimension_semantics<arbitrary>], iteration_bounds = array<i64: 2, 1>, scalar_prefetch = 0 : i64, scratch_operands = 1 : i64, tpu.core_type = #tpu.core_type<tc>, window_params = [{transform_indices = @transform_0, window_bounds = array<i64: 16, 128>}, {transform_indices = @transform_1, window_bounds = array<i64: 16, 128>}, {transform_indices = @transform_2, window_bounds = array<i64: 8, 128>}]} {
    %c1_i32 = arith.constant 1 : i32
    %0 = arith.muli %arg0, %c1_i32 : i32
    %1 = arith.addi %0, %arg1 : i32
    %c0_i32 = arith.constant 0 : i32
    %2 = arith.cmpi eq, %arg1, %c0_i32 : i32
    %3 = arith.extui %2 : i1 to i32
    %c0_i32_0 = arith.constant 0 : i32
    %4 = arith.cmpi ne, %3, %c0_i32_0 : i32
    scf.if %4 {
      %cst = arith.constant 0.000000e+00 : f32
      %11 = vector.broadcast %cst : f32 to vector<8x128xf32>
      %c0 = arith.constant 0 : index
      %c0_5 = arith.constant 0 : index
      %12 = vector.load %arg5[%c0, %c0_5] : memref<8x128xf32, #tpu.memory_space<vmem>>, vector<8x128xf32>
      tpu.vector_store %arg5[%c0, %c0_5], %11 {strides = array<i32>} : memref<8x128xf32, #tpu.memory_space<vmem>>, vector<8x128xf32>,
    } else {
    }
    %c1_i32_1 = arith.constant 1 : i32
    %5 = arith.cmpi slt, %1, %c1_i32_1 : i32
    %6 = arith.extui %5 : i1 to i32
    %c0_i32_2 = arith.constant 0 : i32
    %7 = arith.cmpi ne, %6, %c0_i32_2 : i32
    scf.if %7 {
      %c0 = arith.constant 0 : index
      %c0_5 = arith.constant 0 : index
      %11 = vector.load %arg2[%c0, %c0_5] : memref<16x128xf32, #tpu.memory_space<vmem>>, vector<16x128xf32>
      %c0_6 = arith.constant 0 : index
      %c0_7 = arith.constant 0 : index
      %12 = vector.load %arg3[%c0_6, %c0_7] : memref<16x128xf32, #tpu.memory_space<vmem>>, vector<16x128xf32>
      %13 = math.absf %11 : vector<16x128xf32>
      %cst = arith.constant 0.000000e+00 : f32
      %14 = vector.broadcast %cst : f32 to vector<16x128xf32>
      %15 = arith.subf %14, %13 : vector<16x128xf32>
      %16 = math.exp %15 : vector<16x128xf32>
      %cst_8 = arith.constant 1.000000e+00 : f32
      %17 = vector.broadcast %cst_8 : f32 to vector<16x128xf32>
      %18 = arith.addf %17, %16 : vector<16x128xf32>
      %19 = math.log %18 : vector<16x128xf32>
      %cst_9 = arith.constant 0.000000e+00 : f32
      %20 = vector.broadcast %cst_9 : f32 to vector<16x128xf32>
      %21 = arith.minimumf %11, %20 : vector<16x128xf32>
      %22 = arith.subf %21, %19 : vector<16x128xf32>
      %cst_10 = arith.constant 0.000000e+00 : f32
      %23 = vector.broadcast %cst_10 : f32 to vector<16x128xf32>
      %24 = arith.subf %23, %11 : vector<16x128xf32>
      %cst_11 = arith.constant 0.000000e+00 : f32
      %25 = vector.broadcast %cst_11 : f32 to vector<16x128xf32>
      %26 = arith.minimumf %24, %25 : vector<16x128xf32>
      %27 = arith.subf %26, %19 : vector<16x128xf32>
      %28 = arith.mulf %12, %22 : vector<16x128xf32>
      %cst_12 = arith.constant 5.000000e-01 : f32
      %29 = vector.broadcast %cst_12 : f32 to vector<16x128xf32>
      %30 = arith.mulf %29, %28 : vector<16x128xf32>
      %cst_13 = arith.constant 1.000000e+00 : f32
      %31 = vector.broadcast %cst_13 : f32 to vector<16x128xf32>
      %32 = arith.subf %31, %12 : vector<16x128xf32>
      %33 = arith.mulf %32, %27 : vector<16x128xf32>
      %cst_14 = arith.constant 5.000000e-01 : f32
      %34 = vector.broadcast %cst_14 : f32 to vector<16x128xf32>
      %35 = arith.mulf %34, %33 : vector<16x128xf32>
      %36 = arith.addf %30, %35 : vector<16x128xf32>
      %37 = vector.shape_cast %36 : vector<16x128xf32> to vector<2x8x128xf32>
      %cst_15 = arith.constant dense<0.000000e+00> : vector<8x128xf32>
      %38 = vector.multi_reduction <add>, %37, %cst_15 [0] : vector<2x8x128xf32> to vector<8x128xf32>
      %c0_16 = arith.constant 0 : index
      %c0_17 = arith.constant 0 : index
      %39 = vector.load %arg5[%c0_16, %c0_17] : memref<8x128xf32, #tpu.memory_space<vmem>>, vector<8x128xf32>
      %40 = arith.addf %39, %38 : vector<8x128xf32>
      %c0_18 = arith.constant 0 : index
      %c0_19 = arith.constant 0 : index
      %41 = vector.load %arg5[%c0_18, %c0_19] : memref<8x128xf32, #tpu.memory_space<vmem>>, vector<8x128xf32>
      tpu.vector_store %arg5[%c0_18, %c0_19], %40 {strides = array<i32>} : memref<8x128xf32, #tpu.memory_space<vmem>>, vector<8x128xf32>,
    } else {
    }
    %c0_i32_3 = arith.constant 0 : i32
    %8 = arith.cmpi eq, %arg1, %c0_i32_3 : i32
    %9 = arith.extui %8 : i1 to i32
    %c0_i32_4 = arith.constant 0 : i32
    %10 = arith.cmpi ne, %9, %c0_i32_4 : i32
    scf.if %10 {
      %c0 = arith.constant 0 : index
      %c0_5 = arith.constant 0 : index
      %11 = vector.load %arg5[%c0, %c0_5] : memref<8x128xf32, #tpu.memory_space<vmem>>, vector<8x128xf32>
      %c0_6 = arith.constant 0 : index
      %c0_7 = arith.constant 0 : index
      %12 = vector.load %arg4[%c0_6, %c0_7] : memref<8x128xf32, #tpu.memory_space<vmem>>, vector<8x128xf32>
      tpu.vector_store %arg4[%c0_6, %c0_7], %11 {strides = array<i32>} : memref<8x128xf32, #tpu.memory_space<vmem>>, vector<8x128xf32>,
    } else {
    }
    return
  }
  func.func @transform_0(%arg0: i32, %arg1: i32) -> (i32, i32) {
    %c1_i32 = arith.constant 1 : i32
    %0 = arith.muli %arg0, %c1_i32 : i32
    %1 = arith.addi %0, %arg1 : i32
    %c0_i32 = arith.constant 0 : i32
    %2 = arith.minsi %1, %c0_i32 : i32
    %c0_i32_0 = arith.constant 0 : i32
    %c0_i32_1 = arith.constant 0 : i32
    return %2, %c0_i32_0 : i32, i32
  }
  func.func @transform_1(%arg0: i32, %arg1: i32) -> (i32, i32) {
    %c1_i32 = arith.constant 1 : i32
    %0 = arith.muli %arg0, %c1_i32 : i32
    %1 = arith.addi %0, %arg1 : i32
    %c0_i32 = arith.constant 0 : i32
    %2 = arith.minsi %1, %c0_i32 : i32
    %c0_i32_0 = arith.constant 0 : i32
    %c0_i32_1 = arith.constant 0 : i32
    return %2, %c0_i32_0 : i32, i32
  }
  func.func @transform_2(%arg0: i32, %arg1: i32) -> (i32, i32) {
    %c0_i32 = arith.constant 0 : i32
    %c0_i32_0 = arith.constant 0 : i32
    return %arg0, %c0_i32 : i32, i32
  }
}

</mosaic_0001>

<bundles_post_ra>
// kernel: tpu_custom_call.1
= control target key start
LH: loop header
LB: loop body
LE: loop exit
PB: predicated region body
PF: predicated region fallthrough
CT: control target
= control target key end

     0   :  { %7 = vsyncpa [#allocation4], 0  ;;  %s911_s0 = inlined_call_operand.hbm [shape: f32[16,128], index: 0, kind: input, shape index: {}]   ;;  %s912_s1 = inlined_call_operand.hbm [shape: f32[16,128], index: 1, kind: input, shape index: {}]   ;;  %s913_s2 = inlined_call_operand.hbm [shape: f32[16,128], index: 2, kind: output, shape index: {}]  }
   0x1   :  { %9 = vsyncpa [#allocation4 + $0x1], 0 }
   0x2   :  { %10 = vsyncpa [#allocation7], 0 }
   0x3   :  { %12 = vsyncpa [#allocation7 + $0x1], 0 }
   0x4   :  { %13 = vsyncpa [#allocation5], 0 }
   0x5   :  { %15 = vsyncpa [#allocation5 + $0x1], 0  ;;  %s721_s9 = smov 0   ;;  %s723_s10 = smov 0  }
   0x6   :  { %s725_s11 = smov 0   ;;  %s727_s12 = smov 0  }
   0x7   :  { %s729_s13 = smov 0   ;;  %s731_s14 = smov 0  }
   0x8   :  { %s733_s15 = smov 0   ;;  %s735_s16 = smov 0  }
   0x9 LB: > { %s414_s17 = sadd.s32 4294967295, %s698_s16   ;;  %s415_s18 = sadd.s32 4294967294, %s698_s16   ;;  %s698_s16 = sphi %s735_s16, %s21_s16   ;;  %s694_s15 = sphi %s733_s15, %s932_s15   ;;  %s690_s14 = sphi %s731_s14, %s931_s14   ;;  %s686_s13 = sphi %s729_s13, %s901_s13   ;;  %s682_s12 = sphi %s727_s12, %s930_s12   ;;  %s678_s11 = sphi %s725_s11, %s929_s11   ;;  %s674_s10 = sphi %s723_s10, %s928_s10   ;;  %s670_s9 = sphi %s721_s9, %s927_s9  }
   0xa   : > { %s33_s19 = sadd.s32 1, %s694_s15  ;;  %p667_p1 = scmp.ne.s32.totalorder %s686_s13, 0 }
   0xb   : > { %p35_p0 = scmp.ge.s32.totalorder %s33_s19, 2  ;;  %p54_p2 = scmp.eq.s32.totalorder %s698_s16, 0 }
   0xc   : > { %p59_p3 = scmp.ne.s32.totalorder %s686_s13, %s682_s12  ;;  %p60_p5 = scmp.eq.s32.totalorder %s414_s17, 0 }
   0xd   : > { %s934_s19 = smov (%p35_p0, %s33_s19), 0  ;;  %p767_p4 = por %p667_p1, %p54_p2 }
   0xe   : > { %p771_p6 = por %p60_p5, %p59_p3  ;;  %s101_s22 = ssub.s32 %s694_s15, %s934_s19 }
   0xf   : > { %p102_p7 = scmp.eq.s32.totalorder %s101_s22, 0  ;;  %s104_s23 = sadd.s32 1, %s678_s11 }
  0x10   : > { %s917_s21 = scalar_select %p771_p6, 1, 0 }
  0x11   : > { %s779_s24 = scalar_select %p102_p7, %s678_s11, %s104_s23  }
  0x12   : > { %p114_p8 = scmp.ne.s32.totalorder %s678_s11, %s674_s10  ;;  %p115_p9 = scmp.eq.s32.totalorder %s414_s17, 1 }
  0x13   : > { %p120_p10 = scmp.ne.s32.totalorder %s674_s10, %s670_s9  ;;  %p121_p11 = scmp.eq.s32.totalorder %s415_s18, 1 }
  0x14   : > { %p785_p12 = por %p115_p9, %p114_p8  ;;  %p452_p1 = scmp.lt.s32.totalorder %s698_s16, 2 }
  0x15   : > { %p790_p0 = por %p121_p11, %p120_p10  ;;  %s700_s27 = smov [#allocation3]  }
  0x16   : > { %s918_s25 = scalar_select %p785_p12, 1, 0 }
  0x17   : > { %s919_s26 = scalar_select %p790_p0, 1, 0 }
  0x18   : > { %s155_s28 = sshll.u32 %s700_s27, 4  ;;  %p797_p2 = pnand %p452_p1, %p767_p4  ;;  %s156_s28 = int_to_ptr.vmem [resolvable:$true] %s155_s28 }
  0x19   : > { %s537_s4 = scalar_lea.hbm %s911_s0, 256 }
  0x1a   : > { %p538_p3 = scmp.ne.s32.totalorder %s911_s0, %s537_s4  ;;  %p539_p5 = pneg %p797_p2 }
  0x1b   : > { %p544_p8 = scmp.lt.s32.totalorder %s537_s4, %s537_s4 }
  0x1c   : > { %p540_p7 = pnand %p539_p5, %p538_p3 }
  0x1e   : > { %p541_p4 = pneg %p540_p7 }
  0x20   : > { %p546_p9 = pnand %p544_p8, %p541_p4 }
  0x22   : > { %549 = shalt.err (!%p546_p9)
}
  0x23   : > { %s550_s7 = scalar_lea.vmem %s156_s28, 256  ;;  %s557_s8 = scalar_lea.vmem %s156_s28, 512 }
  0x24   : > { %p551_p10 = scmp.ne.s32.totalorder %s156_s28, %s550_s7  ;;  %p558_p13 = scmp.lt.s32.totalorder %s156_s28, %s156_s28 }
  0x25   : > { %p559_p0 = scmp.lt.s32.totalorder %s557_s8, %s550_s7 }
  0x26   : > { %p553_p11 = pnand %p551_p10, %p539_p5 }
  0x27   : > { %p560_p12 = por %p559_p0, %p558_p13 }
  0x28   : > { %p554_p1 = pneg %p553_p11 }
  0x2a   : > { %p561_p6 = pnand %p560_p12, %p554_p1 }
  0x2c   : > { %564 = shalt.err (!%p561_p6)
}
  0x2d   : > { %s701_s12 = smov 128   ;;  %s702_s17 = smov 8  }
  0x2e   : > { %444 = dma.hbm_to_vmem [thread:$0]  (!%p797_p2), %s911_s0, 256, %s156_s28, [#allocation4], %s701_s12, %s701_s12, %s702_s17  }
  0x2f   : > { %p424_p3 = scmp.ge.s32.totalorder %s698_s16, 1  ;;  %p187_p7 = scmp.lt.s32.totalorder %s698_s16, 3 }
  0x30   : > { %s703_s23 = smov [#allocation6]   ;;  %s565_s4 = scalar_lea.hbm %s912_s1, 256 }
  0x31   : > { %p822_p4 = pnand %p424_p3, %p187_p7  ;;  %s179_s27 = sshll.u32 %s703_s23, 4  ;;  %s180_s27 = int_to_ptr.vmem [resolvable:$true] %s179_s27 }
  0x32   : > { %p566_p6 = scmp.ne.s32.totalorder %s912_s1, %s565_s4  ;;  %p572_p0 = scmp.lt.s32.totalorder %s565_s4, %s565_s4 }
  0x33   : > { %s921_s22 = scalar_select %p822_p4, 1, 0 }
  0x34   : > { %p568_p12 = pnand %p566_p6, %p539_p5 }
  0x36   : > { %p569_p13 = pneg %p568_p12 }
  0x38   : > { %p574_p8 = pnand %p572_p0, %p569_p13 }
  0x3a   : > { %577 = shalt.err (!%p574_p8)
}
  0x3b   : > { %s578_s28 = scalar_lea.vmem %s180_s27, 256  ;;  %s585_s7 = scalar_lea.vmem %s180_s27, 512 }
  0x3c   : > { %p579_p9 = scmp.ne.s32.totalorder %s180_s27, %s578_s28  ;;  %p586_p1 = scmp.lt.s32.totalorder %s180_s27, %s180_s27 }
  0x3d   : > { %p587_p3 = scmp.lt.s32.totalorder %s585_s7, %s578_s28 }
  0x3e   : > { %p581_p10 = pnand %p579_p9, %p539_p5 }
  0x3f   : > { %p588_p7 = por %p587_p3, %p586_p1 }
  0x40   : > { %p582_p11 = pneg %p581_p10 }
  0x42   : > { %p589_p4 = pnand %p588_p7, %p582_p11 }
  0x44   : > { %592 = shalt.err (!%p589_p4)
}
  0x45   : > { %447 = dma.hbm_to_vmem [thread:$0]  (!%p797_p2), %s912_s1, 256, %s180_s27, [#allocation7], %s701_s12, %s701_s12, %s702_s17  }
  0x46   : > { %p922_p6 = scmp.ne.s32.totalorder %s921_s22, 0 }
  0x47   : > { %s193_s20 = sand.u32 (!%p922_p6), 1, %s686_s13   ;;  %p923_p5 = scmp.ne.s32.totalorder (!%p922_p6), %s917_s21, 0 }
  0x48   : > { %191 = sbr.rel (%p922_p6) target bundleno = 164 (0xa4), region = 28  ;;  %s425_s23 = sshll.u32 (!%p922_p6), %s193_s20, 4 }
  0x49   : > { %s194_s30 = scalar_lea.sflag (!%p922_p6), [#allocation4], %s193_s20  ;;  %s197_s3 = scalar_lea.vmem (!%p922_p6), [#allocation3], %s425_s23 }
  0x4d   : > { %656 = dma.done.wait (%p923_p5), %s194_s30, 256  }
  0x4e   : > { %658 = vsyncadd (%p923_p5), %s194_s30, 4294967040  ;;  %s203_s29 = scalar_lea.sflag [#allocation7], %s193_s20  ;;  %s206_s4 = scalar_lea.vmem [#allocation6], %s425_s23 }
  0x4f   : > { %660 = dma.done.wait (%p923_p5), %s203_s29, 256  }
  0x50   : > { %662 = vsyncadd (%p923_p5), %s203_s29, 4294967040  ;;  %s229_s12 = sand.u32 1, %s674_s10   ;;  %v704_v0 = vmov 0.0   ;;  %p428_p2 = scmp.ge.s32.totalorder %s690_s14, 1 }
  0x51   : > { %s857_s17 = sshll.u32 %s229_s12, 3  ;;  %245 = vst [vmem:[#allocation2] sm:$0xff] %v704_v0 }
  0x52   : > { %s231_s22 = scalar_lea.vmem [#allocation8], %s857_s17  ;;  %249 = sbr.rel (%p428_p2) target bundleno = 140 (0x8c), region = 44 }
  0x57   : > { %v250_v1 = vld [vmem:[%s197_s3] sm:$0xff]  ;;  %v251_v2 = vld [vmem:[%s197_s3 + $0x8] sm:$0xff] }
  0x58   : > { %v254_v3 = vand.u32 2147483647, %v250_v1  ;;  %v255_v4 = vand.u32 2147483647, %v251_v2  ;;  %v272_v13 = vsub.f32 0.0, %v250_v1  ;;  %v273_v14 = vsub.f32 0.0, %v251_v2 }
  0x59   : > { %v252_v15 = vld [vmem:[%s206_s4] sm:$0xff]  ;;  %v253_v16 = vld [vmem:[%s206_s4 + $0x8] sm:$0xff]  ;;  %v268_v17 = vmin.f32 %v250_v1, 0.0  ;;  %v269_v20 = vmin.f32 %v251_v2, 0.0 }
  0x5a   : > { %v256_v5 = vsub.f32 0.0, %v254_v3  ;;  %v257_v6 = vsub.f32 0.0, %v255_v4  ;;  %v274_v18 = vmin.f32 %v272_v13, 0.0  ;;  %v275_v21 = vmin.f32 %v273_v14, 0.0  ;;  %v291_v41 = vld [vmem:[#allocation2] sm:$0xff] }
  0x5b   : > { %v282_v24 = vsub.f32 1.0, %v252_v15  ;;  %v283_v26 = vsub.f32 1.0, %v253_v16 }
  0x5c   : > { %v258_v7 = vmul.f32 1.442695, %v256_v5  ;;  %v260_v8 = vmul.f32 1.442695, %v257_v6 }
  0x5e   : > { %529 = vpow2.f32 %v258_v7 }
  0x5f   : > { %531 = vpow2.f32 %v260_v8 }
  0x6b   : > { %v530_v9 = vpop.eup %529 }
  0x6c   : > { %v532_v10 = vpop.eup %531  ;;  %v262_v11 = vadd.f32 1.0, %v530_v9 }
  0x6d   : > { %v263_v12 = vadd.f32 1.0, %v532_v10 }
  0x6e   : > { %533 = vlog2.f32 %v262_v11 }
  0x6f   : > { %535 = vlog2.f32 %v263_v12 }
  0x7b   : > { %v534_v19 = vpop.eup %533 }
  0x7c   : > { %v536_v22 = vpop.eup %535  ;;  %v265_v23 = vmul.f32 0.6931472, %v534_v19 }
  0x7d   : > { %v267_v25 = vmul.f32 0.6931472, %v536_v22 }
  0x7e   : > { %v270_v27 = vsub.f32 %v268_v17, %v265_v23  ;;  %v276_v28 = vsub.f32 %v274_v18, %v265_v23 }
  0x7f   : > { %v271_v29 = vsub.f32 %v269_v20, %v267_v25  ;;  %v277_v30 = vsub.f32 %v275_v21, %v267_v25 }
  0x80   : > { %v278_v31 = vmul.f32 %v270_v27, %v252_v15  ;;  %v284_v32 = vmul.f32 %v282_v24, %v276_v28 }
  0x81   : > { %v279_v33 = vmul.f32 %v271_v29, %v253_v16  ;;  %v285_v34 = vmul.f32 %v283_v26, %v277_v30 }
  0x82   : > { %v280_v35 = vmul.f32 0.5, %v278_v31  ;;  %v286_v36 = vmul.f32 0.5, %v284_v32 }
  0x83   : > { %v281_v37 = vmul.f32 0.5, %v279_v33  ;;  %v287_v38 = vmul.f32 0.5, %v285_v34 }
  0x84   : > { %v288_v39 = vadd.f32 %v286_v36, %v280_v35 }
  0x85   : > { %v289_v40 = vadd.f32 %v287_v38, %v281_v37 }
  0x87   : > { %v290_v42 = vadd.f32 %v289_v40, %v288_v39 }
  0x89   : > { %v292_v43 = vadd.f32 %v291_v41, %v290_v42 }
  0x8b   : > { %293 = vst [vmem:[#allocation2] sm:$0xff] %v292_v43 }
  0x8c PF: > { %s430_s21 = sshll.u32 %s690_s14, 7  ;;  %s313_s28 = sshll.u32 %s231_s22, 4  ;;  %s314_s28 = int_to_ptr.vmem [resolvable:$true] %s313_s28 }
  0x8d   : > { %s311_s6 = scalar_lea.hbm %s913_s2, %s430_s21  ;;  %s300_s7 = scalar_lea.sflag [#allocation5], %s229_s12 }
  0x8e   : > { %s593_s8 = scalar_lea.vmem %s314_s28, 128  ;;  %p924_p12 = scmp.ne.s32.totalorder %s918_s25, 0 }
  0x8f   : > { %p594_p4 = scmp.ne.s32.totalorder %s314_s28, %s593_s8  ;;  %s705_s18 = smov [#allocation8]  }
  0x90   : > { %s597_s20 = sshll.u32 %s705_s18, 4  ;;  %s598_s20 = int_to_ptr.vmem [resolvable:$false] %s597_s20 }
  0x91   : > { %p595_p13 = pnand %p594_p4, %p924_p12  ;;  %s599_s14 = scalar_lea.vmem %s598_s20, 256 }
  0x92   : > { %v297_v44 = vld [vmem:[#allocation2] sm:$0xff]  ;;  %p600_p8 = scmp.lt.s32.totalorder %s314_s28, %s598_s20  ;;  %p601_p9 = scmp.lt.s32.totalorder %s599_s14, %s593_s8 }
  0x93   : > { %298 = vst [vmem:[%s231_s22] sm:$0xff] %v297_v44  ;;  %p596_p0 = pneg %p595_p13 }
  0x94   : > { %p602_p10 = por %p601_p9, %p600_p8 }
  0x96   : > { %p603_p11 = pnand %p602_p10, %p596_p0 }
  0x98   : > { %606 = shalt.err (!%p603_p11)
}
  0x99   : > { %s607_s23 = scalar_lea.hbm %s311_s6, 128  ;;  %s611_s29 = scalar_lea.hbm %s913_s2, 256 }
  0x9a   : > { %p608_p1 = scmp.ne.s32.totalorder %s311_s6, %s607_s23  ;;  %p612_p6 = scmp.lt.s32.totalorder %s311_s6, %s913_s2 }
  0x9b   : > { %p613_p5 = scmp.lt.s32.totalorder %s611_s29, %s607_s23 }
  0x9c   : > { %p609_p3 = pnand %p608_p1, %p924_p12 }
  0x9d   : > { %p614_p2 = por %p613_p5, %p612_p6 }
  0x9e   : > { %p610_p7 = pneg %p609_p3 }
  0xa0   : > { %p615_p4 = pnand %p614_p2, %p610_p7 }
  0xa2   : > { %618 = shalt.err (!%p615_p4)
}
  0xa3   : > { %439 = dma.vmem_to_hbm [thread:$0]  (%p924_p12), %s314_s28, 128, %s311_s6, %s300_s7  }
  0xa4 PF: > { %s325_s17 = sand.u32 1, %s670_s9   ;;  %p925_p13 = scmp.ne.s32.totalorder %s919_s26, 0 }
  0xa5   : > { %p926_p0 = scmp.ge.s32.totalorder %s698_s16, 2  ;;  %s326_s22 = scalar_lea.sflag [#allocation5], %s325_s17 }
  0xa7   : > { %p449_p8 = pnand %p926_p0, %p925_p13 }
  0xa9   : > { %p450_p9 = pneg %p449_p8 }
  0xab   : > { %664 = dma.done.wait (%p450_p9), %s326_s22, 128  }
  0xac   : > { %666 = vsyncadd (%p450_p9), %s326_s22, 4294967168  ;;  %s21_s16 = sadd.s32 1, %s698_s16   ;;  %s927_s9 = smov %s674_s10 }
  0xad   : > { %p18_p10 = scmp.ge.s32.totalorder %s21_s16, 4   ;;  %s928_s10 = smov %s678_s11 }
  0xae   : > { %s929_s11 = smov %s779_s24  ;;  %s930_s12 = smov %s686_s13 }
  0xaf   : > { %s901_s13 = smov 0   ;;  %s931_s14 = smov %s694_s15 }
  0xb0   : > { %s932_s15 = smov %s934_s19  ;;  %20 = sbr.rel (!%p18_p10) target bundleno = 9 (0x9), region = 98 }
  0xb5   :  { %331 = vsyncpa [#allocation4], 1 }
  0xb6   :  { %333 = vsyncpa [#allocation4 + $0x1], 1 }
  0xb7   :  { %334 = vsyncpa [#allocation7], 1 }
  0xb8   :  { %336 = vsyncpa [#allocation7 + $0x1], 1 }
  0xb9   :  { %337 = vsyncpa [#allocation5], 1 }
  0xba   :  { %339 = vsyncpa [#allocation5 + $0x1], 1 }

</bundles_post_ra>
